<compile_context>
chip_gen: v7x
topology: tpu7x:2x2x1
jax: 0.10.0
libtpu: 0.0.40
codegen_flags: <defaults>
</compile_context>

<pallas_src>
import numpy as np
import jax
import jax.numpy as jnp
from jax import lax
from jax.experimental import pallas as pl
from jax.experimental.pallas import tpu as pltpu

_SUBLANE = 8
_LANE = 128


# ----------------------------------------------------------------------------- init
def _position_encoding_init_np(n_position, emb_dim):
    """Numpy re-implementation of the PyTorch init (identical math)."""
    position_enc = np.array(
        [
            [pos / np.power(10000, 2 * (j // 2) / emb_dim) for j in range(emb_dim)]
            if pos != 0
            else np.zeros(emb_dim)
            for pos in range(n_position)
        ]
    )
    position_enc[1:, 0::2] = np.sin(position_enc[1:, 0::2])
    position_enc[1:, 1::2] = np.cos(position_enc[1:, 1::2])
    return position_enc.astype(np.float32)


def position_encoding_init(n_position, emb_dim):
    """Public helper mirroring the PyTorch function (returns a jnp f32 array)."""
    return jnp.asarray(_position_encoding_init_np(n_position, emb_dim))


# ------------------------------------------------------------------------- utilities
def _round_up(x, m):
    return ((x + m - 1) // m) * m


def _default_chunk_rows():
    """Rows gathered per grid step, tuned per TPU generation (2-4 MiB output tile)."""
    try:
        kind = jax.devices()[0].device_kind.lower()
    except Exception:
        return 4096
    return 8192 if "v7" in kind else 4096


def _choose_chunk(total, target):
    """Pick rows-per-step: multiple of 8, <= target.  Prefer a chunk that divides
    `total` exactly so the trailing row slice (a second full pass over the output)
    is never materialized; otherwise pad rows and slice the small tail off."""
    target = _round_up(max(_SUBLANE, min(target, max(total, _SUBLANE))), _SUBLANE)
    if total % _SUBLANE == 0:
        for c in range(target, _SUBLANE - 1, -_SUBLANE):
            if total % c == 0:
                if c >= max(_SUBLANE, target // 4):
                    return c, total  # no padding, no trailing slice
                break
    chunk = target
    return chunk, _round_up(total, chunk)


def _supports_pipeline_mode():
    try:
        pl.BlockSpec((_SUBLANE, _LANE), lambda i: (0, 0), pipeline_mode=pl.Buffered(1))
        return True
    except Exception:
        return False


_HAS_PIPELINE_MODE = _supports_pipeline_mode()


# --------------------------------------------------------------------------- kernel
def _make_gather_kernel(num_k):
    """One grid step gathers `chunk` rows from one `tk`-row tile of the table.

    idx_ref   : (1, chunk) int32      per-chunk row indices
    table_ref : (tk, D_pad) f32       one row-tile of the padded table
    out_ref   : (chunk, D_pad) f32    lane/sublane-dense output tile (resident over k)
    """

    def kernel(idx_ref, table_ref, out_ref):
        tk = table_ref.shape[0]
        chunk = out_ref.shape[0]
        k = pl.program_id(1)

        # onehot[p, r] = (k*tk + p == idx[r]); iota varies along sublanes, the
        # (1, chunk) index row broadcasts along sublanes -> no lane<->sublane
        # relayout of the indices.  (If pl.lower_as_mlir ever shows Mosaic inserting
        # an XLU transpose of this onehot for the dot_general below, flip the onehot
        # to (chunk, tk) and relayout only the tiny index row instead.)
        pos = lax.broadcasted_iota(jnp.int32, (tk, chunk), 0) + k * tk
        onehot = (pos == idx_ref[...]).astype(jnp.float32)  # (tk, chunk)

        # out[r, d] (+)= sum_p onehot[p, r] * table[p, d]   (exact f32 row selection)
        partial = lax.dot_general(
            onehot,
            table_ref[...],
            dimension_numbers=(((0,), (0,)), ((), ())),
            preferred_element_type=jnp.float32,
        )

        if num_k == 1:
            out_ref[...] = partial.astype(out_ref.dtype)
        else:
            @pl.when(k == 0)
            def _():
                out_ref[...] = jnp.zeros_like(out_ref)

            out_ref[...] += partial.astype(out_ref.dtype)

    return kernel


# --------------------------------------------------------------------------- module
class SinusoidalEncoder:
    """JAX/Pallas equivalent of the PyTorch SinusoidalEncoder forward pass."""

    def __init__(self, emb_dim, max_len, *, chunk_rows=None, table_block_rows=256,
                 single_buffer_table=True, core_parallel=False):
        self.emb_dim = emb_dim
        self.max_len = max_len
        self.n_pos = max_len + 1
        self.chunk_rows = int(chunk_rows) if chunk_rows is not None else _default_chunk_rows()
        self.single_buffer_table = single_buffer_table
        # core_parallel=True uses pltpu.CORE_PARALLEL on the chunk axis (recommended
        # on v7x to shard chunks across its 2 TensorCores); default keeps "parallel".
        self.core_parallel = core_parallel

        # ---- build + pad the static sinusoidal table ONCE (hoisted out of forward)
        tbl = _position_encoding_init_np(self.n_pos, emb_dim)          # (n_pos, D) f32
        self.D = emb_dim
        self.D_pad = _round_up(emb_dim, _LANE)
        self.tk = min(_round_up(self.n_pos, _SUBLANE),
                      _round_up(max(table_block_rows, _SUBLANE), _SUBLANE))
        self.n_pos_pad = _round_up(self.n_pos, self.tk)
        self.num_k = self.n_pos_pad // self.tk

        tbl_pad = np.zeros((self.n_pos_pad, self.D_pad), np.float32)
        tbl_pad[: self.n_pos, : self.D] = tbl
        self.table = jnp.asarray(tbl)            # unpadded copy (fallback / reference)
        self.table_padded = jnp.asarray(tbl_pad)  # kernel operand, padded once at init

    def __call__(self, p_sequences, *, use_kernel=None):
        """p_sequences: (batch, n_node) int -> (batch, n_node, emb_dim) f32."""
        p_sequences = jnp.asarray(p_sequences)
        B, N = p_sequences.shape
        total = B * N
        D, D_pad = self.D, self.D_pad

        # Clamp: Mosaic does not bounds-check VMEM reads; out-of-range positions are
        # remapped into [0, n_pos-1] instead of erroring like nn.Embedding.
        idx = jnp.clip(p_sequences.reshape(-1).astype(jnp.int32), 0, self.n_pos - 1)

        if use_kernel is None:
            use_kernel = (total * D * 4) >= (1 << 20)  # kernel only for >= 1 MiB output
        if not use_kernel:
            return jnp.take(self.table, idx, axis=0).reshape(B, N, D)

        chunk, rows_pad = _choose_chunk(total, self.chunk_rows)
        num_chunks = rows_pad // chunk
        if rows_pad != total:
            idx = jnp.pad(idx, (0, rows_pad - total))  # padded slots hit row 0 (zeros)
        idx_2d = idx.reshape(num_chunks, chunk)

        tk, num_k = self.tk, self.num_k

        # Single-buffer the table when its block is constant over the whole grid:
        # it is DMA'd exactly once, so the second pipeline buffer is pure VMEM waste.
        table_spec_kwargs = {}
        if self.single_buffer_table and num_k == 1 and _HAS_PIPELINE_MODE:
            table_spec_kwargs["pipeline_mode"] = pl.Buffered(1)
        table_spec = pl.BlockSpec((tk, D_pad), lambda i, k: (k, 0), **table_spec_kwargs)

        if self.core_parallel and hasattr(pltpu, "CORE_PARALLEL"):
            dim_sem = (pltpu.CORE_PARALLEL, pltpu.ARBITRARY)
        else:
            dim_sem = ("parallel", "arbitrary")

        # Explicit scoped-VMEM budget (v5e defaults to only 16 MiB): double-buffered
        # output tiles + table tile(s) + index blocks + one-hot temporary, with headroom.
        table_bufs = 1 if "pipeline_mode" in table_spec_kwargs else 2
        vmem_need = (2 * chunk * D_pad * 4
                     + table_bufs * tk * D_pad * 4
                     + 2 * _SUBLANE * chunk * 4
                     + tk * chunk * 4)
        vmem_limit = int(min(max(vmem_need * 3 // 2 + (4 << 20), 32 << 20), 64 << 20))

        out = pl.pallas_call(
            _make_gather_kernel(num_k),
            out_shape=jax.ShapeDtypeStruct((rows_pad, D_pad), self.table_padded.dtype),
            grid_spec=pltpu.PrefetchScalarGridSpec(
                num_scalar_prefetch=0,
                grid=(num_chunks, num_k),
                in_specs=[
                    pl.BlockSpec((1, chunk), lambda i, k: (i, 0)),  # per-chunk indices
                    table_spec,                                     # table row-tile
                ],
                out_specs=pl.BlockSpec((chunk, D_pad), lambda i, k: (i, 0)),
            ),
            compiler_params=pltpu.CompilerParams(
                dimension_semantics=dim_sem,
                vmem_limit_bytes=vmem_limit,
            ),
        )(idx_2d, self.table_padded)

        if rows_pad != total:
            out = out[:total]
        if D_pad != D:
            out = out[:, :D]
        return out.reshape(B, N, D)


if __name__ == "__main__":
    emb_dim = 128
    max_len = 16
    batch = 2
    n_node = 8

    enc = SinusoidalEncoder(emb_dim, max_len)

    key = jax.random.PRNGKey(0)
    p_sequences = jax.random.randint(
        key, (batch, n_node), minval=0, maxval=max_len + 1, dtype=jnp.int32
    )

    # Force the kernel path so it is exercised even at this tiny test size
    # (auto-dispatch would pick jnp.take for an 8 KB output).
    out = enc(p_sequences, use_kernel=True)
    out = jax.block_until_ready(out)

    # Reference check (plain JAX gather on the unpadded table) — exact match.
    ref = jnp.take(enc.table, p_sequences.reshape(-1), axis=0).reshape(
        batch, n_node, emb_dim
    )
    assert out.shape == (batch, n_node, emb_dim)
    assert out.dtype == jnp.float32
    np.testing.assert_allclose(np.asarray(out), np.asarray(ref), rtol=0, atol=0)

    print("KERNEL_OK")
</pallas_src>

<mosaic_0001>
module attributes {stable_mosaic.version = 11 : i64} {
  func.func @kernel(%arg0: i32, %arg1: i32, %arg2: memref<1x16xi32, #tpu.memory_space<vmem>>, %arg3: memref<24x128xf32, #tpu.memory_space<vmem>>, %arg4: memref<16x128xf32, #tpu.memory_space<vmem>>) attributes {dimension_semantics = [#tpu.dimension_semantics<parallel>, #tpu.dimension_semantics<arbitrary>], iteration_bounds = array<i64: 1, 1>, scalar_prefetch = 0 : i64, scratch_operands = 0 : i64, tpu.core_type = #tpu.core_type<tc>, window_params = [{transform_indices = @transform_0, window_bounds = array<i64: 1, 16>}, {pipeline_mode = #tpu.pipeline_mode<synchronous>, transform_indices = @transform_1, window_bounds = array<i64: 24, 128>}, {transform_indices = @transform_2, window_bounds = array<i64: 16, 128>}]} {
    %0 = tpu.iota {dimensions = array<i32: 0>} : vector<24x16xi32>
    %c24_i32 = arith.constant 24 : i32
    %1 = arith.muli %arg1, %c24_i32 : i32
    %2 = vector.broadcast %1 : i32 to vector<24x16xi32>
    %3 = arith.addi %0, %2 : vector<24x16xi32>
    %c0 = arith.constant 0 : index
    %c0_0 = arith.constant 0 : index
    %4 = vector.load %arg2[%c0, %c0_0] : memref<1x16xi32, #tpu.memory_space<vmem>>, vector<1x16xi32>
    %5 = vector.broadcast %4 : vector<1x16xi32> to vector<24x16xi32>
    %6 = arith.cmpi eq, %3, %5 : vector<24x16xi32>
    %7 = arith.extui %6 : vector<24x16xi1> to vector<24x16xi32>
    %8 = arith.sitofp %7 : vector<24x16xi32> to vector<24x16xf32>
    %c0_1 = arith.constant 0 : index
    %c0_2 = arith.constant 0 : index
    %9 = vector.load %arg3[%c0_1, %c0_2] : memref<24x128xf32, #tpu.memory_space<vmem>>, vector<24x128xf32>
    %cst = arith.constant dense<0.000000e+00> : vector<16x128xf32>
    %10 = tpu.matmul %8, %9, %cst {dimension_numbers = #tpu.dot_dimension_numbers<[0], [0], [1], [1], [0, 1, 1, 1], [], []>} : vector<24x16xf32>, vector<24x128xf32>, vector<16x128xf32> -> vector<16x128xf32>
    %c0_3 = arith.constant 0 : index
    %c0_4 = arith.constant 0 : index
    %11 = vector.load %arg4[%c0_3, %c0_4] : memref<16x128xf32, #tpu.memory_space<vmem>>, vector<16x128xf32>
    tpu.vector_store %arg4[%c0_3, %c0_4], %10 {strides = array<i32>} : memref<16x128xf32, #tpu.memory_space<vmem>>, vector<16x128xf32>,
    return
  }
  func.func @transform_0(%arg0: i32, %arg1: i32) -> (i32, i32) {
    %c0_i32 = arith.constant 0 : i32
    %c0_i32_0 = arith.constant 0 : i32
    return %arg0, %c0_i32 : i32, i32
  }
  func.func @transform_1(%arg0: i32, %arg1: i32) -> (i32, i32) {
    %c0_i32 = arith.constant 0 : i32
    %c0_i32_0 = arith.constant 0 : i32
    return %arg1, %c0_i32 : i32, i32
  }
  func.func @transform_2(%arg0: i32, %arg1: i32) -> (i32, i32) {
    %c0_i32 = arith.constant 0 : i32
    %c0_i32_0 = arith.constant 0 : i32
    return %arg0, %c0_i32 : i32, i32
  }
}

</mosaic_0001>

<bundles_post_ra>
// kernel: tpu_custom_call.1
= control target key start
LH: loop header
LB: loop body
LE: loop exit
PB: predicated region body
PF: predicated region fallthrough
CT: control target
= control target key end

     0   :  { %7 = vsyncpa [#allocation3], 0  ;;  %s370_s0 = inlined_call_operand.hbm [shape: s32[1,16], index: 0, kind: input, shape index: {}]   ;;  %s371_s1 = inlined_call_operand.hbm [shape: f32[24,128], index: 1, kind: input, shape index: {}]   ;;  %s372_s2 = inlined_call_operand.hbm [shape: f32[16,128], index: 2, kind: output, shape index: {}]  }
   0x1   :  { %8 = vsyncpa [#allocation6], 0 }
   0x2   :  { %9 = vsyncpa [#allocation4], 0  ;;  %s300_s9 = smov [#allocation2]   ;;  %s301_s11 = smov [#allocation5]  }
   0x3   :  { %s16_s10 = sshll.u32 %s300_s9, 4  ;;  %s25_s12 = sshll.u32 %s301_s11, 4  ;;  %s17_s10 = int_to_ptr.vmem [resolvable:$true] %s16_s10  ;;  %s321_s12 = int_to_ptr.vmem [resolvable:$true] %s25_s12 }
   0x4   :  { %s228_s15 = scalar_lea.hbm %s370_s0, 16 }
   0x5   :  { %p229_p0 = scmp.ne.s32.totalorder %s370_s0, %s228_s15  ;;  %p232_p1 = scmp.lt.u32.totalorder %s228_s15, %s370_s0 }
   0x7   :  { %p234_p2 = pnand %p232_p1, %p229_p0 }
   0x9   :  { %237 = shalt.err (!%p234_p2)
}
   0xa   :  { %s238_s20 = scalar_lea.vmem %s17_s10, 16  ;;  %s242_s21 = scalar_lea.vmem %s17_s10, 32 }
   0xb   :  { %p239_p3 = scmp.ne.s32.totalorder %s17_s10, %s238_s20  ;;  %p243_p4 = scmp.lt.s32.totalorder %s17_s10, %s17_s10 }
   0xc   :  { %p244_p5 = scmp.lt.s32.totalorder %s242_s21, %s238_s20 }
   0xe   :  { %p245_p6 = por %p244_p5, %p243_p4 }
  0x10   :  { %p246_p7 = pnand %p245_p6, %p239_p3 }
  0x12   :  { %249 = shalt.err (!%p246_p7)
}
  0x13   :  { %19 = dma.hbm_to_vmem [thread:$0]  %s370_s0, 16, %s17_s10, [#allocation3]  }
  0x14   :  { %s250_s26 = scalar_lea.hbm %s371_s1, 384 }
  0x15   :  { %p251_p8 = scmp.ne.s32.totalorder %s371_s1, %s250_s26  ;;  %p254_p9 = scmp.lt.u32.totalorder %s250_s26, %s371_s1 }
  0x17   :  { %p256_p10 = pnand %p254_p9, %p251_p8 }
  0x19   :  { %259 = shalt.err (!%p256_p10)
}
  0x1a   :  { %s260_s3 = scalar_lea.vmem %s321_s12, 384  ;;  %p265_p12 = scmp.lt.s32.totalorder %s321_s12, %s321_s12 }
  0x1b   :  { %p261_p11 = scmp.ne.s32.totalorder %s321_s12, %s260_s3  ;;  %p266_p13 = scmp.lt.s32.totalorder %s260_s3, %s260_s3 }
  0x1d   :  { %p267_p0 = por %p266_p13, %p265_p12 }
  0x1f   :  { %p268_p1 = pnand %p267_p0, %p261_p11 }
  0x21   :  { %271 = shalt.err (!%p268_p1)
}
  0x22   :  { %s302_s0 = smov 128   ;;  %s303_s4 = smov 8  }
  0x23   :  { %31 = dma.hbm_to_vmem [thread:$0]  %s371_s1, 384, %s321_s12, [#allocation6], %s302_s0, %s302_s0, %s303_s4  }
  0x24   :  { %294 = dma.done.wait [#allocation3], 16  }
  0x25   :  { %295 = vsyncadd [#allocation3], 4294967280 }
  0x26   :  { %296 = dma.done.wait [#allocation6], 384  }
  0x27   :  { %297 = vsyncadd [#allocation6], 4294966912  ;;  %v38_v0 = vlaneseq  ;;  %v198_v3 = vld [vmem:[#allocation2] ss:$0 sm:$0xff]  ;;  %v61_v4 = vld [vmem:[#allocation5] sm:$0xff]  ;;  %v304_v8 = vmov 0.0  }
  0x28   :  { %v62_v5 = vld [vmem:[#allocation5 + $0x8] sm:$0xff]  ;;  %v63_v11 = vld [vmem:[#allocation5 + $0x10] sm:$0xff]  ;;  %vm96_vm3 = vcmask 195584   ;;  %s305_s1 = smov [#allocation7]  }
  0x29   :  { %v39_v1 = vshrl.u32 %v38_v0, 7  ;;  %v218_v7 = vpack.c.bf16 %v62_v5, %v61_v4  ;;  %s185_s7 = sshll.u32 %s305_s1, 4  ;;  %s186_s7 = int_to_ptr.vmem [resolvable:$true] %s185_s7 }
  0x2a   :  { %s272_s8 = scalar_lea.vmem %s186_s7, 256  ;;  %p277_p3 = scmp.lt.s32.totalorder %s186_s7, %s186_s7 }
  0x2b   :  { %v40_v2 = vadd.s32 8, %v39_v1  ;;  %vm52_vm0 = vcmp.eq.s32.totalorder %v39_v1, %v198_v3  ;;  %v41_v6 = vadd.s32 16, %v39_v1  ;;  %219 = vmatprep.subr.bf16.mxu0 %v218_v7  ;;  %p273_p2 = scmp.ne.s32.totalorder %s186_s7, %s272_s8  ;;  %p278_p4 = scmp.lt.s32.totalorder %s272_s8, %s272_s8 }
  0x2c   :  { %v199_v9 = vsel %vm52_vm0, 1.0, %v304_v8  ;;  %221 = vmatpush3.bf16.msra.mxu0 %v218_v7 }
  0x2d   :  { %vm53_vm1 = vcmp.eq.s32.totalorder %v40_v2, %v198_v3  ;;  %64 = vxpose.xlu0.b32.start [1/3] (short) (narrow) %v199_v9, 16  ;;  %vm54_vm2 = vcmp.eq.s32.totalorder %v41_v6, %v198_v3  ;;  %213 = vmatprep.subr.mxu0 %v63_v11  ;;  %p279_p5 = por %p278_p4, %p277_p3 }
  0x2e   :  { %v200_v10 = vsel %vm53_vm1, 1.0, %v304_v8  ;;  %v201_v12 = vsel %vm54_vm2, 1.0, %v304_v8 }
  0x2f   :  { %p280_p6 = pnand %p279_p5, %p273_p2 }
  0x30   :  { %214 = vmatpush3.msra.mxu0 %v63_v11 }
  0x31   :  { %65 = vxpose.xlu0.b32.cont [2/3] (short) (narrow) %v200_v10, 16 }
  0x35   :  { %66 = vxpose.xlu0.b32.end [3/3] (short) (narrow) %v201_v12, 16 }
  0xad   :  { %v80_v13 = vpop.trf.xlu0 }
  0xae   :  { %215 = vmatprep.mubr.msk.f32.mxu0 %vm96_vm3, %v80_v13 }
  0xb1   :  { %v81_v14 = vpop.trf.xlu0 }
  0xb2   :  { %216 = vmatmul.mubr.msk.f32.vlgmr.msra.gmra.mrb[0].mxu0 %vm96_vm3, %v81_v14 }
 0x185   :  { %v217_v15 = vpop.f32.mrb[0].mxu0 }
 0x186   :  { %179 = vst [vmem:[#allocation7 + $0x8] sm:$0xff] %v217_v15  ;;  %v169_v16 = vpop.f32.mrb[1].mxu0 }
 0x187   :  { %178 = vst [vmem:[#allocation7] sm:$0xff] %v169_v16 }
 0x188   :  { %283 = shalt.err (!%p280_p6)
}
 0x189   :  { %s284_s11 = scalar_lea.hbm %s372_s2, 256 }
 0x18a   :  { %p285_p7 = scmp.ne.s32.totalorder %s372_s2, %s284_s11  ;;  %p288_p8 = scmp.lt.u32.totalorder %s284_s11, %s372_s2 }
 0x18c   :  { %p290_p9 = pnand %p288_p8, %p285_p7 }
 0x18e   :  { %293 = shalt.err (!%p290_p9)
}
 0x18f   :  { %191 = dma.vmem_to_hbm [thread:$0]  %s186_s7, 256, %s372_s2, [#allocation4], %s302_s0, %s302_s0, %s303_s4  }
 0x190   :  { %298 = dma.done.wait [#allocation4], 256  }
 0x191   :  { %299 = vsyncadd [#allocation4], 4294967040 }
 0x192   :  { %195 = vsyncpa [#allocation3], 1 }
 0x193   :  { %196 = vsyncpa [#allocation6], 1 }
 0x194   :  { %197 = vsyncpa [#allocation4], 1 }

</bundles_post_ra>
